<compile_context>
chip_gen: v6e
topology: v6e:2x2x1
jax: 0.10.0
libtpu: 0.0.40
codegen_flags: <defaults>
</compile_context>

<pallas_src>
import jax
import jax.numpy as jnp
from jax.experimental import pallas as pl
from jax.experimental.pallas import tpu as pltpu


def gcn_static_kernel(adj_ref, flow_ref, w1_ref, b1_ref, w2_ref, b2_ref, out_ref):
    adj = adj_ref[...]                                                     # (Np, Np)

    # output_1 = relu(A @ linear_1(flow))  -- all batches fused along lanes
    h = jnp.dot(flow_ref[...], w1_ref[...],
                preferred_element_type=jnp.float32) + b1_ref[...]          # (Np, BHp)
    h = jnp.maximum(jnp.dot(adj, h, preferred_element_type=jnp.float32), 0.0)

    # output_2 = relu(A @ linear_2(output_1))  -- W2/b2 zero-padded to full lanes
    h = jnp.dot(h, w2_ref[...],
                preferred_element_type=jnp.float32) + b2_ref[...]          # (Np, BFp)
    h = jnp.maximum(jnp.dot(adj, h, preferred_element_type=jnp.float32), 0.0)

    # dropout(p=0) is identity and the trailing F.relu is idempotent on a relu'd
    # tensor, so this is already the final result. Full-lane unmasked store.
    out_ref[...] = h


def _round_up(x, m):
    return ((x + m - 1) // m) * m


def gcn_static_forward(adj, flow_x, params):
    B, N, F1 = flow_x.shape
    hid_c = params["l1_w"].shape[1]
    bf = B * F1
    bh = B * hid_c

    # Pad node dim to sublane multiple (8) and all lane dims to 128 so every
    # vector load/store inside the kernel is full-tile and unmasked.
    n_pad = _round_up(max(N, 8), 8)
    bf_pad = _round_up(bf, 128)
    bh_pad = _round_up(bh, 128)

    f32 = jnp.float32
    eye_b = jnp.eye(B, dtype=f32)

    # Lane-concatenate the batch: (B, N, F1) -> (N, B*F1)   (layout plumbing only).
    flow_cat = jnp.transpose(flow_x, (1, 0, 2)).reshape(N, bf)
    flow_cat = jnp.pad(flow_cat, ((0, n_pad - N), (0, bf_pad - bf)))

    adj_p = jnp.pad(adj, ((0, n_pad - N), (0, n_pad - N)))

    # Block-diagonal weights so one 2-D dot applies the Linear to every batch block.
    w1_blk = jnp.kron(eye_b, params["l1_w"])                        # (B*F1, B*hid_c)
    w1_blk = jnp.pad(w1_blk, ((0, bf_pad - bf), (0, bh_pad - bh)))
    b1_cat = jnp.pad(jnp.tile(params["l1_b"], (1, B)), ((0, 0), (0, bh_pad - bh)))

    w2_blk = jnp.kron(eye_b, params["l2_w"])                        # (B*hid_c, B*F1)
    w2_blk = jnp.pad(w2_blk, ((0, bh_pad - bh), (0, bf_pad - bf)))
    b2_cat = jnp.pad(jnp.tile(params["l2_b"], (1, B)), ((0, 0), (0, bf_pad - bf)))

    inputs = (adj_p, flow_cat, w1_blk, b1_cat, w2_blk, b2_cat)
    in_bytes = sum(int(x.size) * 4 for x in inputs)
    out_bytes = n_pad * bf_pad * 4
    flops = 2 * (n_pad * bf_pad * bh_pad + n_pad * n_pad * bh_pad
                 + n_pad * bh_pad * bf_pad + n_pad * n_pad * bf_pad)

    vmem = pl.BlockSpec(memory_space=pltpu.MemorySpace.VMEM)   # whole array, no grid
    out_pad = pl.pallas_call(
        gcn_static_kernel,
        out_shape=jax.ShapeDtypeStruct((n_pad, bf_pad), f32),
        in_specs=[vmem] * len(inputs),
        out_specs=vmem,
        cost_estimate=pl.CostEstimate(flops=flops, transcendentals=0,
                                      bytes_accessed=in_bytes + out_bytes),
    )(*inputs)

    # Undo lane concatenation / padding; gnnlayer returns output_2.unsqueeze(2).
    out = out_pad[:N, :bf].reshape(N, B, F1)
    return jnp.transpose(out, (1, 0, 2)).reshape(B, N, 1, F1)


if __name__ == "__main__":
    key = jax.random.PRNGKey(0)
    B, N = 2, 8
    F1 = 6        # hidden_size1 (forced to 6 by GCN_test's Linear(6, hid_c))
    hid_c = 32    # hid_c of the inner GCN_test

    ks = jax.random.split(key, 4)
    flow_x = jax.random.normal(ks[0], (B, N, F1), jnp.float32)          # the "device" arg
    # TODO(synk): FusionWeight is not defined in the reference; substitute a
    # deterministic row-stochastic attention matrix A (softmax of random logits).
    adj = jax.nn.softmax(jax.random.normal(ks[1], (N, N), jnp.float32), axis=-1)

    def lin(k, fan_in, fan_out):
        kw, kb = jax.random.split(k)
        bound = 1.0 / float(fan_in) ** 0.5
        w = jax.random.uniform(kw, (fan_in, fan_out), jnp.float32, -bound, bound)
        b = jax.random.uniform(kb, (1, fan_out), jnp.float32, -bound, bound)
        return w, b

    params = {}
    params["l1_w"], params["l1_b"] = lin(ks[2], F1, hid_c)   # gnnlayer.linear_1
    params["l2_w"], params["l2_b"] = lin(ks[3], hid_c, F1)   # gnnlayer.linear_2

    out = gcn_static_forward(adj, flow_x, params)
    jax.block_until_ready(out)
    assert out.shape == (B, N, 1, F1) and out.dtype == jnp.float32

    # Pure-JAX reference of the module's forward (sanity check).
    h = flow_x @ params["l1_w"] + params["l1_b"]
    h = jnp.maximum(jnp.einsum("nm,bmc->bnc", adj, h), 0.0)
    h = h @ params["l2_w"] + params["l2_b"]
    h = jnp.maximum(jnp.einsum("nm,bmc->bnc", adj, h), 0.0)
    ref = h[:, :, None, :]
    assert bool(jnp.allclose(out, ref, atol=1e-5, rtol=1e-5)), "mismatch vs JAX reference"

    print("KERNEL_OK")
</pallas_src>

<mosaic_0001>
module attributes {stable_mosaic.version = 11 : i64} {
  func.func @gcn_static_kernel(%arg0: memref<8x8xf32, #tpu.memory_space<vmem>>, %arg1: memref<8x128xf32, #tpu.memory_space<vmem>>, %arg2: memref<128x128xf32, #tpu.memory_space<vmem>>, %arg3: memref<1x128xf32, #tpu.memory_space<vmem>>, %arg4: memref<128x128xf32, #tpu.memory_space<vmem>>, %arg5: memref<1x128xf32, #tpu.memory_space<vmem>>, %arg6: memref<8x128xf32, #tpu.memory_space<vmem>>) attributes {dimension_semantics = [], scalar_prefetch = 0 : i64, scratch_operands = 0 : i64, tpu.core_type = #tpu.core_type<tc>} {
    %c0 = arith.constant 0 : index
    %c0_0 = arith.constant 0 : index
    %0 = vector.load %arg0[%c0, %c0_0] : memref<8x8xf32, #tpu.memory_space<vmem>>, vector<8x8xf32>
    %c0_1 = arith.constant 0 : index
    %c0_2 = arith.constant 0 : index
    %1 = vector.load %arg1[%c0_1, %c0_2] : memref<8x128xf32, #tpu.memory_space<vmem>>, vector<8x128xf32>
    %c0_3 = arith.constant 0 : index
    %c0_4 = arith.constant 0 : index
    %2 = vector.load %arg2[%c0_3, %c0_4] : memref<128x128xf32, #tpu.memory_space<vmem>>, vector<128x128xf32>
    %cst = arith.constant dense<0.000000e+00> : vector<8x128xf32>
    %3 = tpu.matmul %1, %2, %cst {dimension_numbers = #tpu.dot_dimension_numbers<[1], [0], [0], [1], [0, 0, 1, 1], [], []>} : vector<8x128xf32>, vector<128x128xf32>, vector<8x128xf32> -> vector<8x128xf32>
    %c0_5 = arith.constant 0 : index
    %c0_6 = arith.constant 0 : index
    %4 = vector.load %arg3[%c0_5, %c0_6] : memref<1x128xf32, #tpu.memory_space<vmem>>, vector<1x128xf32>
    %5 = vector.broadcast %4 : vector<1x128xf32> to vector<8x128xf32>
    %6 = arith.addf %3, %5 : vector<8x128xf32>
    %cst_7 = arith.constant dense<0.000000e+00> : vector<8x128xf32>
    %7 = tpu.matmul %0, %6, %cst_7 {dimension_numbers = #tpu.dot_dimension_numbers<[1], [0], [0], [1], [0, 0, 1, 1], [], []>} : vector<8x8xf32>, vector<8x128xf32>, vector<8x128xf32> -> vector<8x128xf32>
    %cst_8 = arith.constant 0.000000e+00 : f32
    %8 = vector.broadcast %cst_8 : f32 to vector<8x128xf32>
    %9 = arith.maximumf %7, %8 : vector<8x128xf32>
    %c0_9 = arith.constant 0 : index
    %c0_10 = arith.constant 0 : index
    %10 = vector.load %arg4[%c0_9, %c0_10] : memref<128x128xf32, #tpu.memory_space<vmem>>, vector<128x128xf32>
    %cst_11 = arith.constant dense<0.000000e+00> : vector<8x128xf32>
    %11 = tpu.matmul %9, %10, %cst_11 {dimension_numbers = #tpu.dot_dimension_numbers<[1], [0], [0], [1], [0, 0, 1, 1], [], []>} : vector<8x128xf32>, vector<128x128xf32>, vector<8x128xf32> -> vector<8x128xf32>
    %c0_12 = arith.constant 0 : index
    %c0_13 = arith.constant 0 : index
    %12 = vector.load %arg5[%c0_12, %c0_13] : memref<1x128xf32, #tpu.memory_space<vmem>>, vector<1x128xf32>
    %13 = vector.broadcast %12 : vector<1x128xf32> to vector<8x128xf32>
    %14 = arith.addf %11, %13 : vector<8x128xf32>
    %cst_14 = arith.constant dense<0.000000e+00> : vector<8x128xf32>
    %15 = tpu.matmul %0, %14, %cst_14 {dimension_numbers = #tpu.dot_dimension_numbers<[1], [0], [0], [1], [0, 0, 1, 1], [], []>} : vector<8x8xf32>, vector<8x128xf32>, vector<8x128xf32> -> vector<8x128xf32>
    %cst_15 = arith.constant 0.000000e+00 : f32
    %16 = vector.broadcast %cst_15 : f32 to vector<8x128xf32>
    %17 = arith.maximumf %15, %16 : vector<8x128xf32>
    %c0_16 = arith.constant 0 : index
    %c0_17 = arith.constant 0 : index
    %18 = vector.load %arg6[%c0_16, %c0_17] : memref<8x128xf32, #tpu.memory_space<vmem>>, vector<8x128xf32>
    tpu.vector_store %arg6[%c0_16, %c0_17], %17 {strides = array<i32>} : memref<8x128xf32, #tpu.memory_space<vmem>>, vector<8x128xf32>,
    return
  }
}

</mosaic_0001>

<bundles_post_ra>
// kernel: tpu_custom_call.1
= control target key start
LH: loop header
LB: loop body
LE: loop exit
PB: predicated region body
PF: predicated region fallthrough
CT: control target
= control target key end

     0   :  { %11 = vsyncpa [#allocation3], 0  ;;  %s779_s0 = inlined_call_operand.hbm [shape: f32[8,8], index: 0, kind: input, shape index: {}]   ;;  %s780_s1 = inlined_call_operand.hbm [shape: f32[8,128], index: 1, kind: input, shape index: {}]   ;;  %s781_s2 = inlined_call_operand.hbm [shape: f32[128,128], index: 2, kind: input, shape index: {}]   ;;  %s782_s3 = inlined_call_operand.vmem [shape: f32[1,128], index: 3, kind: input, shape index: {}]   ;;  %s783_s4 = inlined_call_operand.hbm [shape: f32[128,128], index: 4, kind: input, shape index: {}]   ;;  %s784_s5 = inlined_call_operand.vmem [shape: f32[1,128], index: 5, kind: input, shape index: {}]   ;;  %s785_s6 = inlined_call_operand.hbm [shape: f32[8,128], index: 6, kind: output, shape index: {}]  }
   0x1   :  { %12 = vsyncpa [#allocation6], 0 }
   0x2   :  { %13 = vsyncpa [#allocation9], 0 }
   0x3   :  { %14 = vsyncpa [#allocation4], 0  ;;  %s666_s21 = smov [#allocation5]   ;;  %s667_s23 = smov [#allocation2]  }
   0x4   :  { %s31_s22 = sshll.u32 %s666_s21, 4  ;;  %s21_s24 = sshll.u32 %s667_s23, 4  ;;  %s32_s22 = int_to_ptr.vmem [resolvable:$true] %s31_s22  ;;  %s22_s24 = int_to_ptr.vmem [resolvable:$true] %s21_s24 }
   0x5   :  { %s566_s25 = scalar_lea.vmem %s32_s22, 128  ;;  %p571_p1 = scmp.lt.s32.totalorder %s32_s22, %s32_s22 }
   0x6   :  { %p567_p0 = scmp.ne.s32.totalorder %s32_s22, %s566_s25  ;;  %p572_p2 = scmp.lt.s32.totalorder %s566_s25, %s566_s25 }
   0x8   :  { %p573_p3 = por %p572_p2, %p571_p1 }
   0xa   :  { %p574_p4 = pnand %p573_p3, %p567_p0 }
   0xc   :  { %577 = shalt.err (!%p574_p4)
}
   0xd   :  { %34 = dma.hbm_to_vmem [thread:$0]  %s780_s1, 128, %s32_s22, [#allocation6]  }
   0xe   :  { %s586_s28 = scalar_lea.vmem %s22_s24, 128  ;;  %p591_p6 = scmp.lt.s32.totalorder %s22_s24, %s22_s24 }
   0xf   :  { %p587_p5 = scmp.ne.s32.totalorder %s22_s24, %s586_s28  ;;  %p592_p7 = scmp.lt.s32.totalorder %s586_s28, %s586_s28 }
  0x11   :  { %p593_p8 = por %p592_p7, %p591_p6 }
  0x13   :  { %p594_p9 = pnand %p593_p8, %p587_p5 }
  0x15   :  { %597 = shalt.err (!%p594_p9)
}
  0x16   :  { %24 = dma.hbm_to_vmem [thread:$0]  %s779_s0, 128, %s22_s24, [#allocation3]  }
  0x17   :  { %s668_s7 = smov [#allocation7]  }
  0x18   :  { %s40_s8 = sshll.u32 %s668_s7, 4  ;;  %s41_s8 = int_to_ptr.vmem [resolvable:$true] %s40_s8 }
  0x19   :  { %s606_s9 = scalar_lea.vmem %s41_s8, 2048  ;;  %p611_p11 = scmp.lt.s32.totalorder %s41_s8, %s41_s8 }
  0x1a   :  { %p607_p10 = scmp.ne.s32.totalorder %s41_s8, %s606_s9  ;;  %p612_p12 = scmp.lt.s32.totalorder %s606_s9, %s606_s9 }
  0x1c   :  { %p613_p13 = por %p612_p12, %p611_p11 }
  0x1e   :  { %p614_p0 = pnand %p613_p13, %p607_p10 }
  0x20   :  { %617 = shalt.err (!%p614_p0)
}
  0x21   :  { %s669_s1 = smov 128   ;;  %s670_s10 = smov 8  }
  0x22   :  { %46 = dma.hbm_to_vmem [thread:$0]  %s781_s2, 2048, %s41_s8, [#allocation6], %s669_s1, %s669_s1, %s670_s10  }
  0x23   :  { %s671_s13 = smov [#allocation8]  }
  0x24   :  { %s54_s14 = sshll.u32 %s671_s13, 4  ;;  %s55_s14 = int_to_ptr.vmem [resolvable:$true] %s54_s14 }
  0x25   :  { %s626_s0 = scalar_lea.vmem %s55_s14, 2048  ;;  %p631_p2 = scmp.lt.s32.totalorder %s55_s14, %s55_s14 }
  0x26   :  { %p627_p1 = scmp.ne.s32.totalorder %s55_s14, %s626_s0  ;;  %p632_p3 = scmp.lt.s32.totalorder %s626_s0, %s626_s0 }
  0x28   :  { %p633_p4 = por %p632_p3, %p631_p2 }
  0x2a   :  { %p634_p5 = pnand %p633_p4, %p627_p1 }
  0x2c   :  { %637 = shalt.err (!%p634_p5)
}
  0x2d   :  { %60 = dma.hbm_to_vmem [thread:$0]  %s783_s4, 2048, %s55_s14, [#allocation9], %s669_s1, %s669_s1, %s670_s10  }
  0x2e   :  { %658 = dma.done.wait [#allocation3], 128  }
  0x2f   :  { %659 = vsyncadd [#allocation3], 4294967168 }
  0x30   :  { %660 = dma.done.wait [#allocation6], 2176  }
  0x31   :  { %661 = vsyncadd [#allocation6], 4294965120 }
  0x32   :  { %662 = dma.done.wait [#allocation9], 2048  }
  0x33   :  { %663 = vsyncadd [#allocation9], 4294965248  ;;  %v672_v0 = vmov 0.0   ;;  %vm673_vm0 = vmmov 0   ;;  %v92_v1 = vld [vmem:[#allocation7 + $0x78] sm:$0xff]  ;;  %v91_v2 = vld [vmem:[#allocation7 + $0x70] sm:$0xff] }
  0x34   :  { %469 = vmatprep.subr.mxu0 %v672_v0  ;;  %501 = vmatprep.mubr.msk.f32.mxu0 %vm673_vm0, %v672_v0  ;;  %v90_v3 = vld [vmem:[#allocation7 + $0x68] sm:$0xff]  ;;  %v89_v4 = vld [vmem:[#allocation7 + $0x60] sm:$0xff]  ;;  %v88_v5 = vld [vmem:[#allocation7 + $0x58] sm:$0xff]  ;;  %vm170_vm1 = vcmask 64512   ;;  %s674_s18 = smov [#allocation10]  }
  0x35   :  { %504 = vmatprep.subr.mxu1 %v672_v0  ;;  %506 = vmatprep.mubr.msk.f32.mxu1 %vm673_vm0, %v672_v0  ;;  %v87_v6 = vld [vmem:[#allocation7 + $0x50] sm:$0xff]  ;;  %v86_v7 = vld [vmem:[#allocation7 + $0x48] sm:$0xff]  ;;  %v85_v8 = vld [vmem:[#allocation7 + $0x40] sm:$0xff]  ;;  %s416_s19 = sshll.u32 %s674_s18, 4  ;;  %s417_s19 = int_to_ptr.vmem [resolvable:$true] %s416_s19 }
  0x36   :  { %470 = vmatpush3.msra.mxu0 %v92_v1  ;;  %v84_v9 = vld [vmem:[#allocation7 + $0x38] sm:$0xff]  ;;  %v83_v10 = vld [vmem:[#allocation7 + $0x30] sm:$0xff]  ;;  %v82_v11 = vld [vmem:[#allocation7 + $0x28] sm:$0xff]  ;;  %s638_s20 = scalar_lea.vmem %s417_s19, 128  ;;  %p643_p7 = scmp.lt.s32.totalorder %s417_s19, %s417_s19 }
  0x37   :  { %471 = vmatprep.subr.mxu0 %v672_v0  ;;  %v81_v12 = vld [vmem:[#allocation7 + $0x20] sm:$0xff]  ;;  %v80_v13 = vld [vmem:[#allocation7 + $0x18] sm:$0xff]  ;;  %v79_v14 = vld [vmem:[#allocation7 + $0x10] sm:$0xff]  ;;  %p639_p6 = scmp.ne.s32.totalorder %s417_s19, %s638_s20  ;;  %p644_p8 = scmp.lt.s32.totalorder %s638_s20, %s638_s20 }
  0x38   :  { %472 = vmatpush3.msra.mxu0 %v91_v2  ;;  %v78_v15 = vld [vmem:[#allocation7 + $0x8] sm:$0xff]  ;;  %v77_v16 = vld [vmem:[#allocation7] sm:$0xff]  ;;  %v76_v17 = vld [vmem:[#allocation5] sm:$0xff] }
  0x39   :  { %473 = vmatprep.subr.mxu0 %v672_v0  ;;  %v427_v18 = vld [vmem:[%s782_s3] ss:$0 sm:$0xff]  ;;  %v260_v23 = vld [vmem:[#allocation8 + $0x78] sm:$0xff]  ;;  %v258_v25 = vld [vmem:[#allocation8 + $0x68] sm:$0xff]  ;;  %p645_p9 = por %p644_p8, %p643_p7 }
  0x3a   :  { %474 = vmatpush3.msra.mxu0 %v90_v3  ;;  %v749_v21 = vld [vmem:[#allocation2] sm:$0xff]  ;;  %v257_v26 = vld [vmem:[#allocation8 + $0x60] sm:$0xff]  ;;  %v256_v27 = vld [vmem:[#allocation8 + $0x58] sm:$0xff] }
  0x3b   :  { %475 = vmatprep.subr.mxu0 %v672_v0  ;;  %v259_v24 = vld [vmem:[#allocation8 + $0x70] sm:$0xff]  ;;  %v254_v29 = vld [vmem:[#allocation8 + $0x48] sm:$0xff]  ;;  %v253_v30 = vld [vmem:[#allocation8 + $0x40] sm:$0xff]  ;;  %p646_p10 = pnand %p645_p9, %p639_p6 }
  0x3c   :  { %476 = vmatpush3.msra.mxu0 %v89_v4  ;;  %v255_v28 = vld [vmem:[#allocation8 + $0x50] sm:$0xff]  ;;  %v252_v31 = vld [vmem:[#allocation8 + $0x38] sm:$0xff]  ;;  %v250_v33 = vld [vmem:[#allocation8 + $0x28] sm:$0xff] }
  0x3d   :  { %477 = vmatprep.subr.mxu0 %v672_v0  ;;  %v251_v32 = vld [vmem:[#allocation8 + $0x30] sm:$0xff]  ;;  %v249_v34 = vld [vmem:[#allocation8 + $0x20] sm:$0xff]  ;;  %v248_v35 = vld [vmem:[#allocation8 + $0x18] sm:$0xff] }
  0x3e   :  { %478 = vmatpush3.msra.mxu0 %v88_v5  ;;  %v247_v36 = vld [vmem:[#allocation8 + $0x10] sm:$0xff]  ;;  %v246_v37 = vld [vmem:[#allocation8 + $0x8] sm:$0xff]  ;;  %v245_v38 = vld [vmem:[#allocation8] sm:$0xff] }
  0x3f   :  { %479 = vmatprep.subr.mxu0 %v672_v0  ;;  %v429_v42 = vld [vmem:[%s784_s5] ss:$0 sm:$0xff] }
  0x40   :  { %480 = vmatpush3.msra.mxu0 %v87_v6 }
  0x41   :  { %481 = vmatprep.subr.mxu0 %v672_v0 }
  0x42   :  { %482 = vmatpush3.msra.mxu0 %v86_v7 }
  0x43   :  { %483 = vmatprep.subr.mxu0 %v672_v0 }
  0x44   :  { %484 = vmatpush3.msra.mxu0 %v85_v8 }
  0x45   :  { %485 = vmatprep.subr.mxu0 %v672_v0 }
  0x46   :  { %486 = vmatpush3.msra.mxu0 %v84_v9 }
  0x47   :  { %487 = vmatprep.subr.mxu0 %v672_v0 }
  0x48   :  { %488 = vmatpush3.msra.mxu0 %v83_v10 }
  0x49   :  { %489 = vmatprep.subr.mxu0 %v672_v0 }
  0x4a   :  { %490 = vmatpush3.msra.mxu0 %v82_v11 }
  0x4b   :  { %491 = vmatprep.subr.mxu0 %v672_v0 }
  0x4c   :  { %492 = vmatpush3.msra.mxu0 %v81_v12 }
  0x4d   :  { %493 = vmatprep.subr.mxu0 %v672_v0 }
  0x4e   :  { %494 = vmatpush3.msra.mxu0 %v80_v13 }
  0x4f   :  { %495 = vmatprep.subr.mxu0 %v672_v0 }
  0x50   :  { %496 = vmatpush3.msra.mxu0 %v79_v14 }
  0x51   :  { %497 = vmatprep.subr.mxu0 %v672_v0 }
  0x52   :  { %498 = vmatpush3.msra.mxu0 %v78_v15 }
  0x53   :  { %499 = vmatprep.subr.mxu0 %v672_v0 }
  0x54   :  { %500 = vmatpush3.msra.mxu0 %v77_v16 }
  0x55   :  { %502 = vmatmul.mubr.f32.vlgmr.msra.gmra.mxu0 %v76_v17  ;;  %544 = vmatprep.subr.mxu0 %v672_v0 }
  0x56   :  { %546 = vmatprep.mubr.msk.f32.mxu0 %vm673_vm0, %v672_v0 }
 0x115   :  { %v166_v19 = vpop.f32.mrf.mxu0 }
 0x116   :  { %v167_v20 = vadd.f32 %v427_v18, %v166_v19 }
 0x117   :  { %v503_v22 = vpop.f32.mrf.mxu0 }
 0x118   :  { %505 = vmatpush3.msra.mxu1 %v167_v20 }
 0x119   :  { %507 = vmatmul.mubr.msk.f32.vlgmr.msra.gmra.mxu1 %vm170_vm1, %v749_v21  ;;  %509 = vmatprep.subr.mxu1 %v672_v0 }
 0x11a   :  { %510 = vmatpush3.msra.mxu1 %v260_v23  ;;  %541 = vmatprep.mubr.msk.f32.mxu1 %vm673_vm0, %v672_v0 }
 0x11b   :  { %511 = vmatprep.subr.mxu1 %v672_v0 }
 0x11c   :  { %512 = vmatpush3.msra.mxu1 %v259_v24 }
 0x11d   :  { %513 = vmatprep.subr.mxu1 %v672_v0 }
 0x11e   :  { %514 = vmatpush3.msra.mxu1 %v258_v25 }
 0x11f   :  { %515 = vmatprep.subr.mxu1 %v672_v0 }
 0x120   :  { %516 = vmatpush3.msra.mxu1 %v257_v26 }
 0x121   :  { %517 = vmatprep.subr.mxu1 %v672_v0 }
 0x122   :  { %518 = vmatpush3.msra.mxu1 %v256_v27 }
 0x123   :  { %519 = vmatprep.subr.mxu1 %v672_v0 }
 0x124   :  { %520 = vmatpush3.msra.mxu1 %v255_v28 }
 0x125   :  { %521 = vmatprep.subr.mxu1 %v672_v0 }
 0x126   :  { %522 = vmatpush3.msra.mxu1 %v254_v29 }
 0x127   :  { %523 = vmatprep.subr.mxu1 %v672_v0 }
 0x128   :  { %524 = vmatpush3.msra.mxu1 %v253_v30 }
 0x129   :  { %525 = vmatprep.subr.mxu1 %v672_v0 }
 0x12a   :  { %526 = vmatpush3.msra.mxu1 %v252_v31 }
 0x12b   :  { %527 = vmatprep.subr.mxu1 %v672_v0 }
 0x12c   :  { %528 = vmatpush3.msra.mxu1 %v251_v32 }
 0x12d   :  { %529 = vmatprep.subr.mxu1 %v672_v0 }
 0x12e   :  { %530 = vmatpush3.msra.mxu1 %v250_v33 }
 0x12f   :  { %531 = vmatprep.subr.mxu1 %v672_v0 }
 0x130   :  { %532 = vmatpush3.msra.mxu1 %v249_v34 }
 0x131   :  { %533 = vmatprep.subr.mxu1 %v672_v0 }
 0x132   :  { %534 = vmatpush3.msra.mxu1 %v248_v35 }
 0x133   :  { %535 = vmatprep.subr.mxu1 %v672_v0 }
 0x134   :  { %536 = vmatpush3.msra.mxu1 %v247_v36 }
 0x135   :  { %537 = vmatprep.subr.mxu1 %v672_v0 }
 0x136   :  { %538 = vmatpush3.msra.mxu1 %v246_v37 }
 0x137   :  { %539 = vmatprep.subr.mxu1 %v672_v0 }
 0x138   :  { %540 = vmatpush3.msra.mxu1 %v245_v38 }
 0x1d9   :  { %v240_v39 = vpop.f32.mrf.mxu1 }
 0x1da   :  { %v244_v40 = vmax.f32 %v240_v39, 0.0 }
 0x1db   :  { %v508_v41 = vpop.f32.mrf.mxu1 }
 0x1dc   :  { %542 = vmatmul.mubr.f32.vlgmr.msra.gmra.mxu1 %v244_v40 }
 0x29c   :  { %v334_v43 = vpop.f32.mrf.mxu1 }
 0x29d   :  { %v335_v44 = vadd.f32 %v429_v42, %v334_v43 }
 0x29e   :  { %v543_v45 = vpop.f32.mrf.mxu1 }
 0x29f   :  { %545 = vmatpush3.msra.mxu0 %v335_v44 }
 0x2a0   :  { %547 = vmatmul.mubr.msk.f32.vlgmr.msra.gmra.mxu0 %vm170_vm1, %v749_v21 }
 0x360   :  { %v404_v46 = vpop.f32.mrf.mxu0 }
 0x361   :  { %v408_v47 = vmax.f32 %v404_v46, 0.0 }
 0x362   :  { %v548_v48 = vpop.f32.mrf.mxu0 }
 0x363   :  { %409 = vst [vmem:[#allocation10] sm:$0xff] %v408_v47 }
 0x364   :  { %649 = shalt.err (!%p646_p10)
}
 0x365   :  { %419 = dma.vmem_to_hbm [thread:$0]  %s417_s19, 128, %s785_s6, [#allocation4]  }
 0x366   :  { %664 = dma.done.wait [#allocation4], 128  }
 0x367   :  { %665 = vsyncadd [#allocation4], 4294967168 }
 0x368   :  { %423 = vsyncpa [#allocation3], 1 }
 0x369   :  { %424 = vsyncpa [#allocation6], 1 }
 0x36a   :  { %425 = vsyncpa [#allocation9], 1 }
 0x36b   :  { %426 = vsyncpa [#allocation4], 1 }

</bundles_post_ra>
